<compile_context>
chip_gen: v6e
topology: v6e:2x2x1
jax: 0.10.0
libtpu: 0.0.40
codegen_flags: <defaults>
</compile_context>

<pallas_src>
import numpy as np
import jax
import jax.numpy as jnp
from jax.experimental import pallas as pl
from jax.experimental.pallas import tpu as pltpu

# ----------------------------- config ---------------------------------------
BIT = 4
LOOP_PARAM_PAD = 2
LOOP_PARAM_SEQ = 8
MAX_LOOP = 16
EMBED_DIM = 32                       # DISCRIMINATOR_CONFIG['embed_dim']
FEAT = 2 ** BIT + LOOP_PARAM_PAD     # logistic input features = 18
HID = 32                             # logistic output features
SF = LOOP_PARAM_SEQ * FEAT           # fused contraction dim = 144
LEAKY_SLOPE = 0.01                   # nn.LeakyReLU default (0 < slope < 1)
BN_EPS = 1e-5


# ----------------------------- kernel ---------------------------------------
def disc_kernel(x_ref, w_ref, b_ref, w3_ref, peb_ref, out_ref):
    """Fused LoopDiscriminator forward on TM rows (natural row-major layout).

    x_ref   : (TM, SF)  coord rows, contiguous natural layout
    w_ref   : (SF, E)   fused logistic+param_fc+BN weight
    b_ref   : (1, E)    fused bias (BN folded in)
    w3_ref  : (1, E)    final projection weight (row vector)
    peb_ref : (TM, 1)   per-row scalar  pe[l] @ W3 + b3
    out_ref : (TM, 1)   logits
    """
    # one (TM, SF) x (SF, E) matmul replaces logistic + param_fc + BN (eval)
    h = jnp.dot(x_ref[...], w_ref[...],
                preferred_element_type=jnp.float32) + b_ref[...]       # (TM, E)
    h = jnp.maximum(h, LEAKY_SLOPE * h)                                # LeakyReLU

    # fc Linear(E, 1): lane reduction (XLU) + folded positional-encoding bias
    logit = jnp.sum(h * w3_ref[...], axis=-1, keepdims=True) + peb_ref[...]
    out_ref[...] = jnp.maximum(logit, LEAKY_SLOPE * logit)             # LeakyReLU


# ----------------------------- param folding (once, at init) -----------------
def sinusoidal_pe(max_len, d_model):
    pos = np.arange(max_len, dtype=np.float32)[:, None]
    div = np.exp(np.arange(0, d_model, 2, dtype=np.float32)
                 * (-np.log(10000.0) / d_model))
    pe = np.zeros((max_len, d_model), dtype=np.float32)
    pe[:, 0::2] = np.sin(pos * div)
    pe[:, 1::2] = np.cos(pos * div)
    return jnp.asarray(pe)


def fold_params(params):
    """Fold logistic Linear + param_fc Linear + eval-BN + pe@W3 offline.

    Returns (W_fused (SF,E), b_fused (1,E), w3_row (1,E), pe_bias (MAX_LOOP,)).
    """
    W1, b1, W2, b2, scale, shift, W3, b3 = params
    E = EMBED_DIM
    # logistic (F->HID) folded into param_fc (S*HID -> E):  W_eff: (S*F, E)
    W2_3d = W2.reshape(LOOP_PARAM_SEQ, HID, E)
    W_eff = jnp.einsum('fk,ske->sfe', W1, W2_3d).reshape(SF, E)
    b_eff = b2.reshape(E) + b1.reshape(HID) @ W2_3d.sum(0)
    # eval-mode BatchNorm1d folded in
    W_fused = W_eff * scale.reshape(1, E)
    b_fused = (b_eff * scale.reshape(E) + shift.reshape(E)).reshape(1, E)
    # pos-embed folded through the final Linear:  pe[l] @ W3 + b3  (scalar / l)
    pe = sinusoidal_pe(MAX_LOOP, E)
    pe_bias = (pe @ W3 + b3).reshape(MAX_LOOP)
    w3_row = W3.reshape(1, E)
    return W_fused, b_fused, w3_row, pe_bias


# ----------------------------- wrapper ---------------------------------------
def _round_up(x, m):
    return ((x + m - 1) // m) * m


def loop_discriminator(coord, fused, *, tm=1024):
    """coord: (B, L, S, F) float32  ->  (L, B, 1) float32."""
    W_fused, b_fused, w3_row, pe_bias = fused
    B, L, S, F = coord.shape
    rows = B * L

    # --- tile policy: tiny problems get ONE round_up(rows,128)-row tile; ------
    # --- large problems tile at tm=1024 (v7x megacore splits once >= 2 tiles) -
    tm_eff = int(min(tm, _round_up(rows, 128)))
    num_tiles = pl.cdiv(rows, tm_eff)
    rows_padded = num_tiles * tm_eff

    # coord in natural row-major layout (contiguous DMA per tile); pad only the
    # row remainder (zero-size pad when rows is already a tile multiple).
    x = coord.reshape(rows, SF)
    peb = jnp.tile(pe_bias[:L], (B,))                  # row b*L+l -> pe_bias[l]
    if rows_padded != rows:
        x = jnp.pad(x, ((0, rows_padded - rows), (0, 0)))
        peb = jnp.pad(peb, (0, rows_padded - rows))
    peb = peb.reshape(rows_padded, 1)

    out = pl.pallas_call(
        disc_kernel,
        out_shape=jax.ShapeDtypeStruct((rows_padded, 1), jnp.float32),
        grid_spec=pltpu.PrefetchScalarGridSpec(
            num_scalar_prefetch=0,
            grid=(num_tiles,),
            in_specs=[
                pl.BlockSpec((tm_eff, SF), lambda i: (i, 0)),        # coord tile
                pl.BlockSpec((SF, EMBED_DIM), lambda i: (0, 0)),     # fused W
                pl.BlockSpec((1, EMBED_DIM), lambda i: (0, 0)),      # fused b
                pl.BlockSpec((1, EMBED_DIM), lambda i: (0, 0)),      # W3 row
                pl.BlockSpec((tm_eff, 1), lambda i: (i, 0)),         # pe/b3 bias
            ],
            out_specs=pl.BlockSpec((tm_eff, 1), lambda i: (i, 0)),
        ),
        compiler_params=pltpu.CompilerParams(
            dimension_semantics=("parallel",)),
    )(x, W_fused, b_fused, w3_row, peb)

    # (rows_padded, 1) -> drop padding -> [B, L] -> [L, B, 1]
    out = out[:rows, 0].reshape(B, L)
    return out.transpose(1, 0)[:, :, None]


# ----------------------------- reference (pure JAX) ---------------------------
def loop_discriminator_ref(coord, params):
    W1, b1, W2, b2, scale, shift, W3, b3 = params
    B, L, S, F = coord.shape
    E = EMBED_DIM
    h = jnp.einsum('blsf,fk->blsk', coord, W1) + b1.reshape(HID)   # logistic
    h = h.reshape(B * L, S * HID)                                  # flatten(2,3)+flatten(0,1)
    h = h @ W2 + b2.reshape(E)                                     # param_fc Linear
    h = h * scale.reshape(E) + shift.reshape(E)                    # BatchNorm1d (eval)
    h = jnp.where(h >= 0, h, LEAKY_SLOPE * h)                      # LeakyReLU
    h = h.reshape(B, L, E).transpose(1, 0, 2)                      # transpose(0,1)
    pe = sinusoidal_pe(MAX_LOOP, E)
    h = h + pe[:L][:, None, :]                                     # pos_embed
    o = h @ W3 + b3.reshape(1)                                     # fc Linear
    return jnp.where(o >= 0, o, LEAKY_SLOPE * o)                   # LeakyReLU


# ----------------------------- params + main ---------------------------------
def make_params(key):
    ks = jax.random.split(key, 11)

    def uinit(k, shape, fan_in):
        bound = 1.0 / np.sqrt(fan_in)
        return jax.random.uniform(k, shape, jnp.float32, -bound, bound)

    W1 = uinit(ks[0], (FEAT, HID), FEAT)
    b1 = uinit(ks[1], (1, HID), FEAT)
    W2 = uinit(ks[2], (HID * LOOP_PARAM_SEQ, EMBED_DIM), HID * LOOP_PARAM_SEQ)
    b2 = uinit(ks[3], (1, EMBED_DIM), HID * LOOP_PARAM_SEQ)
    gamma = jax.random.uniform(ks[4], (EMBED_DIM,), jnp.float32, 0.5, 1.5)
    beta = jax.random.uniform(ks[5], (EMBED_DIM,), jnp.float32, -0.5, 0.5)
    rmean = jax.random.uniform(ks[6], (EMBED_DIM,), jnp.float32, -0.5, 0.5)
    rvar = jax.random.uniform(ks[7], (EMBED_DIM,), jnp.float32, 0.5, 1.5)
    W3 = uinit(ks[8], (EMBED_DIM, 1), EMBED_DIM)
    b3 = uinit(ks[9], (1, 1), EMBED_DIM)

    inv_std = 1.0 / jnp.sqrt(rvar + BN_EPS)
    scale = (gamma * inv_std).reshape(1, EMBED_DIM)
    shift = (beta - rmean * gamma * inv_std).reshape(1, EMBED_DIM)
    return (W1, b1, W2, b2, scale, shift, W3, b3), ks[10]


if __name__ == "__main__":
    S, F = LOOP_PARAM_SEQ, FEAT
    params, data_key = make_params(jax.random.PRNGKey(0))
    fused = fold_params(params)            # parameter folding hoisted to init
    fwd = jax.jit(loop_discriminator)

    # --- small demo shape (rows=16 -> one 128-row tile, single grid step) ----
    B, L = 2, 8                            # L <= MAX_LOOP
    k1, k2 = jax.random.split(data_key)
    coord = jax.random.normal(k1, (B, L, S, F), jnp.float32)
    out = jax.block_until_ready(fwd(coord, fused))
    assert out.shape == (L, B, 1), out.shape
    ref = jax.block_until_ready(loop_discriminator_ref(coord, params))
    np.testing.assert_allclose(np.asarray(out), np.asarray(ref),
                               rtol=2e-5, atol=2e-5)

    # --- larger shape (rows=4096 -> 4 x 1024-row tiles, megacore path) -------
    B2, L2 = 256, MAX_LOOP
    coord2 = jax.random.normal(k2, (B2, L2, S, F), jnp.float32)
    out2 = jax.block_until_ready(fwd(coord2, fused))
    assert out2.shape == (L2, B2, 1), out2.shape
    ref2 = jax.block_until_ready(loop_discriminator_ref(coord2, params))
    np.testing.assert_allclose(np.asarray(out2), np.asarray(ref2),
                               rtol=2e-5, atol=2e-5)

    print("KERNEL_OK")
</pallas_src>

<mosaic_0001>
module attributes {stable_mosaic.version = 11 : i64} {
  func.func @disc_kernel(%arg0: i32, %arg1: memref<128x144xf32, #tpu.memory_space<vmem>>, %arg2: memref<144x32xf32, #tpu.memory_space<vmem>>, %arg3: memref<1x32xf32, #tpu.memory_space<vmem>>, %arg4: memref<1x32xf32, #tpu.memory_space<vmem>>, %arg5: memref<128x1xf32, #tpu.memory_space<vmem>>, %arg6: memref<128x1xf32, #tpu.memory_space<vmem>>) attributes {dimension_semantics = [#tpu.dimension_semantics<parallel>], iteration_bounds = array<i64: 1>, scalar_prefetch = 0 : i64, scratch_operands = 0 : i64, tpu.core_type = #tpu.core_type<tc>, window_params = [{transform_indices = @transform_0, window_bounds = array<i64: 128, 144>}, {pipeline_mode = #tpu.pipeline_mode<synchronous>, transform_indices = @transform_1, window_bounds = array<i64: 144, 32>}, {pipeline_mode = #tpu.pipeline_mode<synchronous>, transform_indices = @transform_2, window_bounds = array<i64: 1, 32>}, {pipeline_mode = #tpu.pipeline_mode<synchronous>, transform_indices = @transform_3, window_bounds = array<i64: 1, 32>}, {transform_indices = @transform_4, window_bounds = array<i64: 128, 1>}, {transform_indices = @transform_5, window_bounds = array<i64: 128, 1>}]} {
    %c0 = arith.constant 0 : index
    %c0_0 = arith.constant 0 : index
    %0 = vector.load %arg1[%c0, %c0_0] : memref<128x144xf32, #tpu.memory_space<vmem>>, vector<128x144xf32>
    %c0_1 = arith.constant 0 : index
    %c0_2 = arith.constant 0 : index
    %1 = vector.load %arg2[%c0_1, %c0_2] : memref<144x32xf32, #tpu.memory_space<vmem>>, vector<144x32xf32>
    %cst = arith.constant dense<0.000000e+00> : vector<128x32xf32>
    %2 = tpu.matmul %0, %1, %cst {dimension_numbers = #tpu.dot_dimension_numbers<[1], [0], [0], [1], [0, 0, 1, 1], [], []>} : vector<128x144xf32>, vector<144x32xf32>, vector<128x32xf32> -> vector<128x32xf32>
    %c0_3 = arith.constant 0 : index
    %c0_4 = arith.constant 0 : index
    %3 = vector.load %arg3[%c0_3, %c0_4] : memref<1x32xf32, #tpu.memory_space<vmem>>, vector<1x32xf32>
    %4 = vector.broadcast %3 : vector<1x32xf32> to vector<128x32xf32>
    %5 = arith.addf %2, %4 : vector<128x32xf32>
    %cst_5 = arith.constant 0.00999999977 : f32
    %6 = vector.broadcast %cst_5 : f32 to vector<128x32xf32>
    %7 = arith.mulf %6, %5 : vector<128x32xf32>
    %8 = arith.maximumf %5, %7 : vector<128x32xf32>
    %c0_6 = arith.constant 0 : index
    %c0_7 = arith.constant 0 : index
    %9 = vector.load %arg4[%c0_6, %c0_7] : memref<1x32xf32, #tpu.memory_space<vmem>>, vector<1x32xf32>
    %10 = vector.broadcast %9 : vector<1x32xf32> to vector<128x32xf32>
    %11 = arith.mulf %8, %10 : vector<128x32xf32>
    %cst_8 = arith.constant dense<0.000000e+00> : vector<128xf32>
    %12 = vector.multi_reduction <add>, %11, %cst_8 [1] : vector<128x32xf32> to vector<128xf32>
    %13 = vector.shape_cast %12 : vector<128xf32> to vector<128x1xf32>
    %c0_9 = arith.constant 0 : index
    %c0_10 = arith.constant 0 : index
    %14 = vector.load %arg5[%c0_9, %c0_10] : memref<128x1xf32, #tpu.memory_space<vmem>>, vector<128x1xf32>
    %15 = arith.addf %13, %14 : vector<128x1xf32>
    %cst_11 = arith.constant 0.00999999977 : f32
    %16 = vector.broadcast %cst_11 : f32 to vector<128x1xf32>
    %17 = arith.mulf %16, %15 : vector<128x1xf32>
    %18 = arith.maximumf %15, %17 : vector<128x1xf32>
    %c0_12 = arith.constant 0 : index
    %c0_13 = arith.constant 0 : index
    %19 = vector.load %arg6[%c0_12, %c0_13] : memref<128x1xf32, #tpu.memory_space<vmem>>, vector<128x1xf32>
    tpu.vector_store %arg6[%c0_12, %c0_13], %18 {strides = array<i32>} : memref<128x1xf32, #tpu.memory_space<vmem>>, vector<128x1xf32>,
    return
  }
  func.func @transform_0(%arg0: i32) -> (i32, i32) {
    %c0_i32 = arith.constant 0 : i32
    %c0_i32_0 = arith.constant 0 : i32
    return %arg0, %c0_i32 : i32, i32
  }
  func.func @transform_1(%arg0: i32) -> (i32, i32) {
    %c0_i32 = arith.constant 0 : i32
    %c0_i32_0 = arith.constant 0 : i32
    %c0_i32_1 = arith.constant 0 : i32
    return %c0_i32, %c0_i32_0 : i32, i32
  }
  func.func @transform_2(%arg0: i32) -> (i32, i32) {
    %c0_i32 = arith.constant 0 : i32
    %c0_i32_0 = arith.constant 0 : i32
    %c0_i32_1 = arith.constant 0 : i32
    return %c0_i32, %c0_i32_0 : i32, i32
  }
  func.func @transform_3(%arg0: i32) -> (i32, i32) {
    %c0_i32 = arith.constant 0 : i32
    %c0_i32_0 = arith.constant 0 : i32
    %c0_i32_1 = arith.constant 0 : i32
    return %c0_i32, %c0_i32_0 : i32, i32
  }
  func.func @transform_4(%arg0: i32) -> (i32, i32) {
    %c0_i32 = arith.constant 0 : i32
    %c0_i32_0 = arith.constant 0 : i32
    return %arg0, %c0_i32 : i32, i32
  }
  func.func @transform_5(%arg0: i32) -> (i32, i32) {
    %c0_i32 = arith.constant 0 : i32
    %c0_i32_0 = arith.constant 0 : i32
    return %arg0, %c0_i32 : i32, i32
  }
}

</mosaic_0001>

<bundles_post_ra>
// kernel: tile.9
= control target key start
LH: loop header
LB: loop body
LE: loop exit
PB: predicated region body
PF: predicated region fallthrough
CT: control target
= control target key end

     0   :  { %vm8_vm0 = vcmask 64512   ;;  %vm14_vm1 = vcmask 130112   ;;  %s42_s0 = inlined_call_operand.vmem [shape: f32[2,8], index: 0, kind: input, shape index: {}]   ;;  %s43_s1 = inlined_call_operand.vmem [shape: f32[16], index: 1, kind: output, shape index: {}]  }
   0x1   :  { %v5_v0 = vld [vmem:[%s42_s0] sm:$0x3]  ;;  %s25_s0 = smov 8  }
   0x2   :  { %6 = vst [vmem:[#allocation1] sm:$0x3] %v5_v0 }
   0x9   :  { %v11_v1 = vld [vmem:[#allocation1 + $0x1] sm:$0x1]   ;;  %v7_v2 = vld [vmem:[#allocation1] sm:$0x1]  }
   0xa   :  { %12 = vrot.lane.b32.xlu0 %v11_v1, %s25_s0  ;;  %9 = vst.msk [vmem:[#allocation0] sm:$0x1] %vm8_vm0, %v7_v2  }
  0x7c   :  { %v13_v3 = vpop.permute.xlu0 %12  }
  0x7d   :  { %15 = vst.msk [vmem:[#allocation0] sm:$0x1] %vm14_vm1, %v13_v3  }
  0x84   :  { %v20_v4 = vld [vmem:[#allocation0] sm:$0x1] }
  0x85   :  { %23 = vst [vmem:[%s43_s1] sm:$0x1] %v20_v4 }

// kernel: tile.8
= control target key start
LH: loop header
LB: loop body
LE: loop exit
PB: predicated region body
PF: predicated region fallthrough
CT: control target
= control target key end

     0   :  { %s22_s0 = inlined_call_operand.vmem [shape: f32[8], index: 0, kind: input, shape index: {}]   ;;  %s23_s1 = inlined_call_operand.vmem [shape: f32[2,8], index: 1, kind: output, shape index: {}]  }
   0x1   :  { %v4_v0 = vld [vmem:[%s22_s0] ss:$0 sm:$0xff] }
   0x2   :  { %5 = vst [vmem:[%s23_s1] sm:$0x3] %v4_v0 }

// kernel: squeeze.1
= control target key start
LH: loop header
LB: loop body
LE: loop exit
PB: predicated region body
PF: predicated region fallthrough
CT: control target
= control target key end

     0   :  { %s77_s0 = inlined_call_operand.vmem [shape: f32[16], index: 0, kind: input, shape index: {}]   ;;  %s78_s1 = inlined_call_operand.hbm [shape: f32[2,8], index: 1, kind: output, shape index: {}]  }
   0x1   :  { %v6_v0 = vld [vmem:[%s77_s0] sm:$0x1] }
   0x2   :  { %2 = vsyncpa [#allocation1], 0  ;;  %7 = vst [vmem:[#allocation3] sm:$0x1] %v6_v0  ;;  %vm9_vm0 = vcmask 64512   ;;  %s59_s0 = smov 120  }
   0x3   :  { %s60_s8 = smov [#allocation0]  }
   0x4   :  { %s29_s9 = sshll.u32 %s60_s8, 4  ;;  %s30_s9 = int_to_ptr.vmem [resolvable:$true] %s29_s9 }
   0x5   :  { %s37_s10 = scalar_lea.vmem %s30_s9, 32  ;;  %p42_p1 = scmp.lt.s32.totalorder %s30_s9, %s30_s9 }
   0x6   :  { %p38_p0 = scmp.ne.s32.totalorder %s30_s9, %s37_s10  ;;  %p43_p2 = scmp.lt.s32.totalorder %s37_s10, %s37_s10 }
   0x8   :  { %p44_p3 = por %p43_p2, %p42_p1 }
   0x9   :  { %v11_v1 = vld [vmem:[#allocation3] sm:$0x1]  }
   0xa   :  { %v8_v2 = vld [vmem:[#allocation3] sm:$0x1]   ;;  %12 = vrot.lane.b32.xlu0 %v11_v1, %s59_s0  ;;  %p45_p4 = pnand %p44_p3, %p38_p0 }
   0xb   :  { %10 = vst.msk [vmem:[#allocation2] sm:$0x1] %vm9_vm0, %v8_v2  }
  0x7c   :  { %v13_v3 = vpop.permute.xlu0 %12  }
  0x7d   :  { %16 = vst.msk [vmem:[#allocation2 + $0x1] sm:$0x1] %vm9_vm0, %v13_v3  }
  0x84   :  { %v21_v4 = vld [vmem:[#allocation2] sm:$0x3] }
  0x85   :  { %24 = vst [vmem:[#allocation0] sm:$0x3] %v21_v4 }
  0x86   :  { %48 = shalt.err (!%p45_p4)
}
  0x87   :  { %32 = dma.vmem_to_hbm [thread:$0]  %s30_s9, 32, %s78_s1, [#allocation1]  }
  0x88   :  { %57 = dma.done.wait [#allocation1], 32  }
  0x89   :  { %58 = vsyncadd [#allocation1], 4294967264 }
  0x8a   :  { %34 = vsyncpa [#allocation1], 1 }

// kernel: loop_discriminator.1
= control target key start
LH: loop header
LB: loop body
LE: loop exit
PB: predicated region body
PF: predicated region fallthrough
CT: control target
= control target key end

     0   :  { %v515_v0 = vmov 0.0   ;;  %vm77_vm0 = vcmask 130048   ;;  %vm326_vm1 = vcmask 261120   ;;  %vm439_vm2 = vcmask 7168   ;;  %s918_s1 = inlined_call_operand.vmem [shape: f32[144,32], index: 1, kind: input, shape index: {}]   ;;  %s919_s0 = inlined_call_operand.vmem [shape: f32[128,144], index: 0, kind: input, shape index: {}]   ;;  %s920_s2 = inlined_call_operand.vmem [shape: f32[1,32], index: 2, kind: input, shape index: {}]   ;;  %s921_s3 = inlined_call_operand.vmem [shape: f32[1,32], index: 3, kind: input, shape index: {}]   ;;  %s922_s4 = inlined_call_operand.vmem [shape: f32[128,1], index: 4, kind: input, shape index: {}]   ;;  %s923_s5 = inlined_call_operand.vmem [shape: f32[128,1], index: 5, kind: output, shape index: {}]  }
   0x1   :  { %126 = vmatprep.subr.mxu0 %v515_v0  ;;  %478 = vmatprep.subr.mxu1 %v515_v0  ;;  %v67_v1 = vld [vmem:[%s918_s1 + $0x78] sm:$0xff]  ;;  %v66_v2 = vld [vmem:[%s918_s1 + $0x70] sm:$0xff]  ;;  %v65_v3 = vld [vmem:[%s918_s1 + $0x68] sm:$0xff] }
   0x2   :  { %127 = vmatpush1.msra.mxu0 %v67_v1  ;;  %496 = vmatpush1.msra.mxu1 %v67_v1  ;;  %v64_v4 = vld [vmem:[%s918_s1 + $0x60] sm:$0xff]  ;;  %v63_v5 = vld [vmem:[%s918_s1 + $0x58] sm:$0xff]  ;;  %v62_v6 = vld [vmem:[%s918_s1 + $0x50] sm:$0xff] }
   0x3   :  { %128 = vmatprep.subr.mxu0 %v515_v0  ;;  %479 = vmatprep.subr.mxu1 %v515_v0  ;;  %v61_v7 = vld [vmem:[%s918_s1 + $0x48] sm:$0xff]  ;;  %v60_v8 = vld [vmem:[%s918_s1 + $0x40] sm:$0xff]  ;;  %v59_v9 = vld [vmem:[%s918_s1 + $0x38] sm:$0xff] }
   0x4   :  { %129 = vmatpush1.msra.mxu0 %v66_v2  ;;  %497 = vmatpush1.msra.mxu1 %v66_v2  ;;  %v58_v10 = vld [vmem:[%s918_s1 + $0x30] sm:$0xff]  ;;  %v57_v11 = vld [vmem:[%s918_s1 + $0x28] sm:$0xff]  ;;  %v56_v12 = vld [vmem:[%s918_s1 + $0x20] sm:$0xff] }
   0x5   :  { %130 = vmatprep.subr.mxu0 %v515_v0  ;;  %480 = vmatprep.subr.mxu1 %v515_v0  ;;  %v55_v13 = vld [vmem:[%s918_s1 + $0x18] sm:$0xff]  ;;  %v54_v14 = vld [vmem:[%s918_s1 + $0x10] sm:$0xff]  ;;  %v53_v15 = vld [vmem:[%s918_s1 + $0x8] sm:$0xff] }
   0x6   :  { %131 = vmatpush1.msra.mxu0 %v65_v3  ;;  %498 = vmatpush1.msra.mxu1 %v65_v3  ;;  %v52_v16 = vld [vmem:[%s918_s1] sm:$0xff]  ;;  %v69_v17 = vld [vmem:[%s918_s1 + $0x88] sm:$0xff]  ;;  %v23_v23 = vld [vmem:[%s919_s0 + $0x18] sm:$0xff] }
   0x7   :  { %132 = vmatprep.subr.mxu0 %v515_v0  ;;  %481 = vmatprep.subr.mxu1 %v515_v0  ;;  %v68_v18 = vld [vmem:[%s918_s1 + $0x80] sm:$0xff]  ;;  %v21_v19 = vld [vmem:[%s919_s0 + $0x8] sm:$0xff]  ;;  %v39_v24 = vld [vmem:[%s919_s0 + $0x98] sm:$0xff] }
   0x8   :  { %133 = vmatpush1.msra.mxu0 %v64_v4  ;;  %499 = vmatpush1.msra.mxu1 %v64_v4  ;;  %v37_v20 = vld [vmem:[%s919_s0 + $0x88] sm:$0xff]  ;;  %v20_v21 = vld [vmem:[%s919_s0] sm:$0xff]  ;;  %v22_v25 = vld [vmem:[%s919_s0 + $0x10] sm:$0xff] }
   0x9   :  { %134 = vmatprep.subr.mxu0 %v515_v0  ;;  %482 = vmatprep.subr.mxu1 %v515_v0  ;;  %v36_v22 = vld [vmem:[%s919_s0 + $0x80] sm:$0xff]  ;;  %v38_v26 = vld [vmem:[%s919_s0 + $0x90] sm:$0xff]  ;;  %v25_v27 = vld [vmem:[%s919_s0 + $0x28] sm:$0xff] }
   0xa   :  { %135 = vmatpush1.msra.mxu0 %v63_v5  ;;  %500 = vmatpush1.msra.mxu1 %v63_v5  ;;  %v41_v28 = vld [vmem:[%s919_s0 + $0xa8] sm:$0xff]  ;;  %v24_v29 = vld [vmem:[%s919_s0 + $0x20] sm:$0xff]  ;;  %v27_v31 = vld [vmem:[%s919_s0 + $0x38] sm:$0xff] }
   0xb   :  { %136 = vmatprep.subr.mxu0 %v515_v0  ;;  %483 = vmatprep.subr.mxu1 %v515_v0  ;;  %v40_v30 = vld [vmem:[%s919_s0 + $0xa0] sm:$0xff]  ;;  %v43_v32 = vld [vmem:[%s919_s0 + $0xb8] sm:$0xff]  ;;  %v26_v33 = vld [vmem:[%s919_s0 + $0x30] sm:$0xff] }
   0xc   :  { %137 = vmatpush1.msra.mxu0 %v62_v6  ;;  %501 = vmatpush1.msra.mxu1 %v62_v6  ;;  %v42_v34 = vld [vmem:[%s919_s0 + $0xb0] sm:$0xff]  ;;  %v29_v35 = vld [vmem:[%s919_s0 + $0x48] sm:$0xff]  ;;  %v28_v37 = vld [vmem:[%s919_s0 + $0x40] sm:$0xff] }
   0xd   :  { %138 = vmatprep.subr.mxu0 %v515_v0  ;;  %484 = vmatprep.subr.mxu1 %v515_v0  ;;  %v45_v36 = vld [vmem:[%s919_s0 + $0xc8] sm:$0xff]  ;;  %v44_v38 = vld [vmem:[%s919_s0 + $0xc0] sm:$0xff]  ;;  %v31_v39 = vld [vmem:[%s919_s0 + $0x58] sm:$0xff] }
   0xe   :  { %139 = vmatpush1.msra.mxu0 %v61_v7  ;;  %502 = vmatpush1.msra.mxu1 %v61_v7  ;;  %v47_v40 = vld [vmem:[%s919_s0 + $0xd8] sm:$0xff]  ;;  %v30_v41 = vld [vmem:[%s919_s0 + $0x50] sm:$0xff]  ;;  %v33_v43 = vld [vmem:[%s919_s0 + $0x68] sm:$0xff] }
   0xf   :  { %140 = vmatprep.subr.mxu0 %v515_v0  ;;  %485 = vmatprep.subr.mxu1 %v515_v0  ;;  %v46_v42 = vld [vmem:[%s919_s0 + $0xd0] sm:$0xff]  ;;  %v49_v44 = vld [vmem:[%s919_s0 + $0xe8] sm:$0xff]  ;;  %v32_v45 = vld [vmem:[%s919_s0 + $0x60] sm:$0xff] }
  0x10   :  { %141 = vmatpush1.msra.mxu0 %v60_v8  ;;  %503 = vmatpush1.msra.mxu1 %v60_v8  ;;  %v48_v46 = vld [vmem:[%s919_s0 + $0xe0] sm:$0xff]  ;;  %v35_v47 = vld [vmem:[%s919_s0 + $0x78] sm:$0xff]  ;;  %v34_v49 = vld [vmem:[%s919_s0 + $0x70] sm:$0xff] }
  0x11   :  { %142 = vmatprep.subr.mxu0 %v515_v0  ;;  %486 = vmatprep.subr.mxu1 %v515_v0  ;;  %v51_v48 = vld [vmem:[%s919_s0 + $0xf8] sm:$0xff]  ;;  %v50_v50 = vld [vmem:[%s919_s0 + $0xf0] sm:$0xff]  ;;  %v751_v51 = vld [vmem:[%s920_s2] ss:$0 sm:$0xff] }
  0x12   :  { %143 = vmatpush1.msra.mxu0 %v59_v9  ;;  %504 = vmatpush1.msra.mxu1 %v59_v9  ;;  %v758_v62 = vld [vmem:[%s921_s3] ss:$0 sm:$0xff] }
  0x13   :  { %144 = vmatprep.subr.mxu0 %v515_v0  ;;  %487 = vmatprep.subr.mxu1 %v515_v0 }
  0x14   :  { %145 = vmatpush1.msra.mxu0 %v58_v10  ;;  %505 = vmatpush1.msra.mxu1 %v58_v10 }
  0x15   :  { %146 = vmatprep.subr.mxu0 %v515_v0  ;;  %488 = vmatprep.subr.mxu1 %v515_v0 }
  0x16   :  { %147 = vmatpush1.msra.mxu0 %v57_v11  ;;  %506 = vmatpush1.msra.mxu1 %v57_v11 }
  0x17   :  { %148 = vmatprep.subr.mxu0 %v515_v0  ;;  %489 = vmatprep.subr.mxu1 %v515_v0 }
  0x18   :  { %149 = vmatpush1.msra.mxu0 %v56_v12  ;;  %507 = vmatpush1.msra.mxu1 %v56_v12 }
  0x19   :  { %150 = vmatprep.subr.mxu0 %v515_v0  ;;  %490 = vmatprep.subr.mxu1 %v515_v0 }
  0x1a   :  { %151 = vmatpush1.msra.mxu0 %v55_v13  ;;  %508 = vmatpush1.msra.mxu1 %v55_v13 }
  0x1b   :  { %152 = vmatprep.subr.mxu0 %v515_v0  ;;  %491 = vmatprep.subr.mxu1 %v515_v0 }
  0x1c   :  { %153 = vmatpush1.msra.mxu0 %v54_v14  ;;  %509 = vmatpush1.msra.mxu1 %v54_v14 }
  0x1d   :  { %154 = vmatprep.subr.mxu0 %v515_v0  ;;  %492 = vmatprep.subr.mxu1 %v515_v0 }
  0x1e   :  { %155 = vmatpush1.msra.mxu0 %v53_v15  ;;  %510 = vmatpush1.msra.mxu1 %v53_v15 }
  0x1f   :  { %156 = vmatprep.subr.mxu0 %v515_v0  ;;  %493 = vmatprep.subr.mxu1 %v515_v0 }
  0x20   :  { %157 = vmatpush1.msra.mxu0 %v52_v16  ;;  %511 = vmatpush1.msra.mxu1 %v52_v16 }
  0x21   :  { %186 = vmatprep.subr.mxu0 %v515_v0  ;;  %494 = vmatprep.subr.mxu1 %v515_v0 }
  0x22   :  { %187 = vmatpush2.msra.mxu0 %v69_v17  ;;  %512 = vmatpush2.msra.mxu1 %v69_v17 }
  0x23   :  { %188 = vmatprep.subr.mxu0 %v515_v0  ;;  %495 = vmatprep.subr.mxu1 %v515_v0 }
  0x24   :  { %189 = vmatpush2.msra.mxu0 %v68_v18  ;;  %513 = vmatpush2.msra.mxu1 %v68_v18 }
  0x25   :  { %461 = vmatprep.mubr.msk.f32.mxu0 %vm77_vm0, %v21_v19  ;;  %469 = vmatprep.mubr.msk.f32.mxu1 %vm77_vm0, %v37_v20 }
  0x26   :  { %191 = vmatmul.mubr.f32.vlgmr.msra.gmra.mxu0 %v20_v21  ;;  %231 = vmatmul.mubr.f32.vlgmr.msra.gmra.mxu1 %v36_v22 }
  0x27   :  { %462 = vmatprep.mubr.msk.f32.mxu0 %vm77_vm0, %v23_v23  ;;  %470 = vmatprep.mubr.msk.f32.mxu1 %vm77_vm0, %v39_v24 }
  0x2a   :  { %196 = vmatmul.mubr.f32.gmra.mxu0 %v22_v25  ;;  %236 = vmatmul.mubr.f32.gmra.mxu1 %v38_v26 }
  0x2b   :  { %463 = vmatprep.mubr.msk.f32.mxu0 %vm77_vm0, %v25_v27  ;;  %471 = vmatprep.mubr.msk.f32.mxu1 %vm77_vm0, %v41_v28 }
  0x2e   :  { %201 = vmatmul.mubr.f32.gmra.mxu0 %v24_v29  ;;  %241 = vmatmul.mubr.f32.gmra.mxu1 %v40_v30 }
  0x2f   :  { %464 = vmatprep.mubr.msk.f32.mxu0 %vm77_vm0, %v27_v31  ;;  %472 = vmatprep.mubr.msk.f32.mxu1 %vm77_vm0, %v43_v32 }
  0x32   :  { %206 = vmatmul.mubr.f32.gmra.mxu0 %v26_v33  ;;  %246 = vmatmul.mubr.f32.gmra.mxu1 %v42_v34 }
  0x33   :  { %465 = vmatprep.mubr.msk.f32.mxu0 %vm77_vm0, %v29_v35  ;;  %473 = vmatprep.mubr.msk.f32.mxu1 %vm77_vm0, %v45_v36 }
  0x36   :  { %211 = vmatmul.mubr.f32.gmra.mxu0 %v28_v37  ;;  %251 = vmatmul.mubr.f32.gmra.mxu1 %v44_v38 }
  0x37   :  { %466 = vmatprep.mubr.msk.f32.mxu0 %vm77_vm0, %v31_v39  ;;  %474 = vmatprep.mubr.msk.f32.mxu1 %vm77_vm0, %v47_v40 }
  0x3a   :  { %216 = vmatmul.mubr.f32.gmra.mxu0 %v30_v41  ;;  %256 = vmatmul.mubr.f32.gmra.mxu1 %v46_v42 }
  0x3b   :  { %467 = vmatprep.mubr.msk.f32.mxu0 %vm77_vm0, %v33_v43  ;;  %475 = vmatprep.mubr.msk.f32.mxu1 %vm77_vm0, %v49_v44 }
  0x3e   :  { %221 = vmatmul.mubr.f32.gmra.mxu0 %v32_v45  ;;  %261 = vmatmul.mubr.f32.gmra.mxu1 %v48_v46 }
  0x3f   :  { %468 = vmatprep.mubr.msk.f32.mxu0 %vm77_vm0, %v35_v47  ;;  %476 = vmatprep.mubr.msk.f32.mxu1 %vm77_vm0, %v51_v48 }
  0x42   :  { %226 = vmatmul.mubr.f32.gmra.mxu0 %v34_v49  ;;  %266 = vmatmul.mubr.f32.gmra.mxu1 %v50_v50 }
  0xe6   :  { %v192_v52 = vpop.f32.mrf.mxu0  ;;  %v232_v53 = vpop.f32.mrf.mxu1 }
  0xe7   :  { %v193_v54 = vadd.f32 %v751_v51, %v192_v52  ;;  %v233_v55 = vadd.f32 %v751_v51, %v232_v53 }
  0xe8   :  { %v194_v56 = vpop.f32.mrf.mxu0  ;;  %v234_v57 = vpop.f32.mrf.mxu1 }
  0xe9   :  { %v271_v58 = vmul.f32 0.01, %v193_v54  ;;  %v279_v59 = vmul.f32 0.01, %v233_v55 }
  0xea   :  { %v197_v60 = vpop.f32.mrf.mxu0  ;;  %v237_v61 = vpop.f32.mrf.mxu1 }
  0xeb   :  { %v287_v63 = vmax.f32 %v193_v54, %v271_v58  ;;  %v198_v0 = vadd.f32 %v751_v51, %v197_v60  ;;  %v238_v1 = vadd.f32 %v751_v51, %v237_v61  ;;  %v295_v2 = vmax.f32 %v233_v55, %v279_v59 }
  0xec   :  { %v199_v3 = vpop.f32.mrf.mxu0  ;;  %v239_v4 = vpop.f32.mrf.mxu1 }
  0xed   :  { %v272_v5 = vmul.f32 0.01, %v198_v0  ;;  %v280_v6 = vmul.f32 0.01, %v238_v1  ;;  %v310_v7 = vmul.f32 %v758_v62, %v287_v63  ;;  %v318_v17 = vmul.f32 %v758_v62, %v295_v2 }
  0xee   :  { %v202_v8 = vpop.f32.mrf.mxu0  ;;  %v242_v9 = vpop.f32.mrf.mxu1 }
  0xef   :  { %v296_v10 = vmax.f32 %v238_v1, %v280_v6  ;;  %v203_v11 = vadd.f32 %v751_v51, %v202_v8  ;;  %v243_v12 = vadd.f32 %v751_v51, %v242_v9  ;;  %v288_v13 = vmax.f32 %v198_v0, %v272_v5 }
  0xf0   :  { %v204_v14 = vpop.f32.mrf.mxu0  ;;  %v327_v15 = vsel %vm326_vm1, %v310_v7, 0.0  ;;  %v244_v16 = vpop.f32.mrf.mxu1  ;;  %v351_v29 = vsel %vm326_vm1, %v318_v17, 0.0 }
  0xf1   :  { %v273_v18 = vmul.f32 0.01, %v203_v11  ;;  %v281_v19 = vmul.f32 0.01, %v243_v12  ;;  %328 = vadd.xlane.f32.xlu0 %v327_v15  ;;  %v319_v20 = vmul.f32 %v758_v62, %v296_v10  ;;  %v311_v31 = vmul.f32 %v758_v62, %v288_v13 }
  0xf2   :  { %v207_v21 = vpop.f32.mrf.mxu0  ;;  %v247_v22 = vpop.f32.mrf.mxu1 }
  0xf3   :  { %v289_v23 = vmax.f32 %v203_v11, %v273_v18  ;;  %v208_v24 = vadd.f32 %v751_v51, %v207_v21  ;;  %v248_v25 = vadd.f32 %v751_v51, %v247_v22  ;;  %v297_v26 = vmax.f32 %v243_v12, %v281_v19 }
  0xf4   :  { %v354_v27 = vsel %vm326_vm1, %v319_v20, 0.0  ;;  %v209_v28 = vpop.f32.mrf.mxu0  ;;  %v249_v30 = vpop.f32.mrf.mxu1  ;;  %v330_v43 = vsel %vm326_vm1, %v311_v31, 0.0 }
  0xf5   :  { %v274_v32 = vmul.f32 0.01, %v208_v24  ;;  %v282_v33 = vmul.f32 0.01, %v248_v25  ;;  %355 = vadd.xlane.f32.xlu1 %v354_v27  ;;  %352 = vadd.xlane.f32.xlu0 %v351_v29  ;;  %v312_v34 = vmul.f32 %v758_v62, %v289_v23  ;;  %v320_v45 = vmul.f32 %v758_v62, %v297_v26 }
  0xf6   :  { %v212_v35 = vpop.f32.mrf.mxu0  ;;  %v252_v36 = vpop.f32.mrf.mxu1 }
  0xf7   :  { %v290_v37 = vmax.f32 %v208_v24, %v274_v32  ;;  %v213_v38 = vadd.f32 %v751_v51, %v212_v35  ;;  %v253_v39 = vadd.f32 %v751_v51, %v252_v36  ;;  %v298_v40 = vmax.f32 %v248_v25, %v282_v33 }
  0xf8   :  { %v214_v41 = vpop.f32.mrf.mxu0  ;;  %v333_v42 = vsel %vm326_vm1, %v312_v34, 0.0  ;;  %v254_v44 = vpop.f32.mrf.mxu1  ;;  %v357_v58 = vsel %vm326_vm1, %v320_v45, 0.0 }
  0xf9   :  { %v275_v46 = vmul.f32 0.01, %v213_v38  ;;  %v283_v47 = vmul.f32 0.01, %v253_v39  ;;  %334 = vadd.xlane.f32.xlu1 %v333_v42  ;;  %331 = vadd.xlane.f32.xlu0 %v330_v43  ;;  %v313_v48 = vmul.f32 %v758_v62, %v290_v37  ;;  %v321_v60 = vmul.f32 %v758_v62, %v298_v40  ;;  %v384_v41 = vld [vmem:[%s922_s4 + $0x48] sm:$0xff]  ;;  %v383_v42 = vld [vmem:[%s922_s4 + $0x40] sm:$0xff] }
  0xfa   :  { %v217_v49 = vpop.f32.mrf.mxu0  ;;  %v257_v50 = vpop.f32.mrf.mxu1 }
  0xfb   :  { %v291_v52 = vmax.f32 %v213_v38, %v275_v46  ;;  %v218_v53 = vadd.f32 %v751_v51, %v217_v49  ;;  %v258_v54 = vadd.f32 %v751_v51, %v257_v50  ;;  %v299_v55 = vmax.f32 %v253_v39, %v283_v47  ;;  %v375_v38 = vld [vmem:[%s922_s4] sm:$0xff]  ;;  %v376_v49 = vld [vmem:[%s922_s4 + $0x8] sm:$0xff] }
  0xfc   :  { %v219_v56 = vpop.f32.mrf.mxu0  ;;  %v336_v57 = vsel %vm326_vm1, %v313_v48, 0.0  ;;  %v259_v59 = vpop.f32.mrf.mxu1  ;;  %v360_v8 = vsel %vm326_vm1, %v321_v60, 0.0  ;;  %v377_v48 = vld [vmem:[%s922_s4 + $0x10] sm:$0xff] }
  0xfd   :  { %v276_v61 = vmul.f32 0.01, %v218_v53  ;;  %v284_v63 = vmul.f32 0.01, %v258_v54  ;;  %337 = vadd.xlane.f32.xlu1 %v336_v57  ;;  %358 = vadd.xlane.f32.xlu0 %v357_v58  ;;  %v314_v0 = vmul.f32 %v758_v62, %v291_v52  ;;  %v322_v11 = vmul.f32 %v758_v62, %v299_v55  ;;  %v378_v59 = vld [vmem:[%s922_s4 + $0x18] sm:$0xff]  ;;  %v385_v60 = vld [vmem:[%s922_s4 + $0x50] sm:$0xff] }
  0xfe   :  { %v222_v1 = vpop.f32.mrf.mxu0  ;;  %v262_v2 = vpop.f32.mrf.mxu1 }
  0xff   :  { %v292_v3 = vmax.f32 %v218_v53, %v276_v61  ;;  %v223_v4 = vadd.f32 %v751_v51, %v222_v1  ;;  %v263_v5 = vadd.f32 %v751_v51, %v262_v2  ;;  %v300_v6 = vmax.f32 %v258_v54, %v284_v63 }
 0x100   :  { %v224_v7 = vpop.f32.mrf.mxu0  ;;  %v339_v9 = vsel %vm326_vm1, %v314_v0, 0.0  ;;  %v264_v10 = vpop.f32.mrf.mxu1  ;;  %v363_v23 = vsel %vm326_vm1, %v322_v11, 0.0 }
 0x101   :  { %v277_v12 = vmul.f32 0.01, %v223_v4  ;;  %v285_v13 = vmul.f32 0.01, %v263_v5  ;;  %361 = vadd.xlane.f32.xlu1 %v360_v8  ;;  %340 = vadd.xlane.f32.xlu0 %v339_v9  ;;  %v315_v14 = vmul.f32 %v758_v62, %v292_v3  ;;  %v323_v25 = vmul.f32 %v758_v62, %v300_v6  ;;  %v386_v6 = vld [vmem:[%s922_s4 + $0x58] sm:$0xff]  ;;  %v379_v7 = vld [vmem:[%s922_s4 + $0x20] sm:$0xff] }
 0x102   :  { %v227_v15 = vpop.f32.mrf.mxu0  ;;  %v267_v16 = vpop.f32.mrf.mxu1 }
 0x103   :  { %v293_v17 = vmax.f32 %v223_v4, %v277_v12  ;;  %v228_v18 = vadd.f32 %v751_v51, %v227_v15  ;;  %v268_v19 = vadd.f32 %v751_v51, %v267_v16  ;;  %v301_v20 = vmax.f32 %v263_v5, %v285_v13  ;;  %v380_v16 = vld [vmem:[%s922_s4 + $0x28] sm:$0xff] }
 0x104   :  { %v229_v21 = vpop.f32.mrf.mxu0  ;;  %v342_v22 = vsel %vm326_vm1, %v315_v14, 0.0  ;;  %v269_v24 = vpop.f32.mrf.mxu1  ;;  %v366_v51 = vsel %vm326_vm1, %v323_v25, 0.0 }
 0x105   :  { %v278_v26 = vmul.f32 0.01, %v228_v18  ;;  %v286_v27 = vmul.f32 0.01, %v268_v19  ;;  %343 = vadd.xlane.f32.xlu1 %v342_v22  ;;  %364 = vadd.xlane.f32.xlu0 %v363_v23  ;;  %v316_v28 = vmul.f32 %v758_v62, %v293_v17  ;;  %v324_v32 = vmul.f32 %v758_v62, %v301_v20  ;;  %v387_v17 = vld [vmem:[%s922_s4 + $0x60] sm:$0xff] }
 0x107   :  { %v294_v29 = vmax.f32 %v228_v18, %v278_v26  ;;  %v345_v30 = vsel %vm326_vm1, %v316_v28, 0.0  ;;  %v302_v31 = vmax.f32 %v268_v19, %v286_v27  ;;  %v369_v35 = vsel %vm326_vm1, %v324_v32, 0.0  ;;  %v388_v26 = vld [vmem:[%s922_s4 + $0x68] sm:$0xff]  ;;  %v381_v27 = vld [vmem:[%s922_s4 + $0x30] sm:$0xff] }
 0x109   :  { %367 = vadd.xlane.f32.xlu1 %v366_v51  ;;  %346 = vadd.xlane.f32.xlu0 %v345_v30  ;;  %v317_v33 = vmul.f32 %v758_v62, %v294_v29  ;;  %v325_v36 = vmul.f32 %v758_v62, %v302_v31 }
 0x10b   :  { %v348_v34 = vsel %vm326_vm1, %v317_v33, 0.0  ;;  %v372_v37 = vsel %vm326_vm1, %v325_v36, 0.0  ;;  %v389_v36 = vld [vmem:[%s922_s4 + $0x70] sm:$0xff] }
 0x10d   :  { %349 = vadd.xlane.f32.xlu1 %v348_v34  ;;  %370 = vadd.xlane.f32.xlu0 %v369_v35  ;;  %v382_v35 = vld [vmem:[%s922_s4 + $0x38] sm:$0xff] }
 0x111   :  { %373 = vadd.xlane.f32.xlu1 %v372_v37 }
 0x17a   :  { %v329_v39 = vpop.xlane.xlu0 %328 }
 0x17b   :  { %v391_v40 = vadd.f32 %v375_v38, %v329_v39 }
 0x17d   :  { %v407_v62 = vmul.f32 0.01, %v391_v40 }
 0x17e   :  { %v356_v43 = vpop.xlane.xlu1 %355  ;;  %v353_v44 = vpop.xlane.xlu0 %352 }
 0x17f   :  { %v423_v45 = vmax.f32 %v391_v40, %v407_v62  ;;  %v400_v46 = vadd.f32 %v384_v41, %v356_v43  ;;  %v399_v47 = vadd.f32 %v383_v42, %v353_v44  ;;  %v390_v44 = vld [vmem:[%s922_s4 + $0x78] sm:$0xff] }
 0x181   :  { %440 = vst.msk [vmem:[%s923_s5] sm:$0xff] %vm439_vm2, %v423_v45  ;;  %v416_v50 = vmul.f32 0.01, %v400_v46  ;;  %v415_v52 = vmul.f32 0.01, %v399_v47 }
 0x182   :  { %v335_v53 = vpop.xlane.xlu1 %334  ;;  %v332_v54 = vpop.xlane.xlu0 %331 }
 0x183   :  { %v432_v55 = vmax.f32 %v400_v46, %v416_v50  ;;  %v431_v56 = vmax.f32 %v399_v47, %v415_v52  ;;  %v393_v57 = vadd.f32 %v377_v48, %v335_v53  ;;  %v392_v58 = vadd.f32 %v376_v49, %v332_v54 }
 0x185   :  { %449 = vst.msk [vmem:[%s923_s5 + $0x48] sm:$0xff] %vm439_vm2, %v432_v55  ;;  %448 = vst.msk [vmem:[%s923_s5 + $0x40] sm:$0xff] %vm439_vm2, %v431_v56  ;;  %v409_v61 = vmul.f32 0.01, %v393_v57  ;;  %v408_v63 = vmul.f32 0.01, %v392_v58 }
 0x186   :  { %v338_v0 = vpop.xlane.xlu1 %337  ;;  %v359_v1 = vpop.xlane.xlu0 %358 }
 0x187   :  { %v425_v2 = vmax.f32 %v393_v57, %v409_v61  ;;  %v424_v3 = vmax.f32 %v392_v58, %v408_v63  ;;  %v394_v4 = vadd.f32 %v378_v59, %v338_v0  ;;  %v401_v5 = vadd.f32 %v385_v60, %v359_v1 }
 0x189   :  { %442 = vst.msk [vmem:[%s923_s5 + $0x10] sm:$0xff] %vm439_vm2, %v425_v2  ;;  %441 = vst.msk [vmem:[%s923_s5 + $0x8] sm:$0xff] %vm439_vm2, %v424_v3  ;;  %v410_v8 = vmul.f32 0.01, %v394_v4  ;;  %v417_v9 = vmul.f32 0.01, %v401_v5 }
 0x18a   :  { %v362_v10 = vpop.xlane.xlu1 %361  ;;  %v341_v11 = vpop.xlane.xlu0 %340 }
 0x18b   :  { %v426_v12 = vmax.f32 %v394_v4, %v410_v8  ;;  %v433_v13 = vmax.f32 %v401_v5, %v417_v9  ;;  %v402_v14 = vadd.f32 %v386_v6, %v362_v10  ;;  %v395_v15 = vadd.f32 %v379_v7, %v341_v11 }
 0x18d   :  { %443 = vst.msk [vmem:[%s923_s5 + $0x18] sm:$0xff] %vm439_vm2, %v426_v12  ;;  %450 = vst.msk [vmem:[%s923_s5 + $0x50] sm:$0xff] %vm439_vm2, %v433_v13  ;;  %v418_v18 = vmul.f32 0.01, %v402_v14  ;;  %v411_v19 = vmul.f32 0.01, %v395_v15 }
 0x18e   :  { %v344_v20 = vpop.xlane.xlu1 %343  ;;  %v365_v21 = vpop.xlane.xlu0 %364 }
 0x18f   :  { %v434_v22 = vmax.f32 %v402_v14, %v418_v18  ;;  %v427_v23 = vmax.f32 %v395_v15, %v411_v19  ;;  %v396_v24 = vadd.f32 %v380_v16, %v344_v20  ;;  %v403_v25 = vadd.f32 %v387_v17, %v365_v21 }
 0x191   :  { %451 = vst.msk [vmem:[%s923_s5 + $0x58] sm:$0xff] %vm439_vm2, %v434_v22  ;;  %444 = vst.msk [vmem:[%s923_s5 + $0x20] sm:$0xff] %vm439_vm2, %v427_v23  ;;  %v412_v28 = vmul.f32 0.01, %v396_v24  ;;  %v419_v29 = vmul.f32 0.01, %v403_v25 }
 0x192   :  { %v368_v30 = vpop.xlane.xlu1 %367  ;;  %v347_v31 = vpop.xlane.xlu0 %346 }
 0x193   :  { %v428_v51 = vmax.f32 %v396_v24, %v412_v28  ;;  %v435_v32 = vmax.f32 %v403_v25, %v419_v29  ;;  %v404_v33 = vadd.f32 %v388_v26, %v368_v30  ;;  %v397_v34 = vadd.f32 %v381_v27, %v347_v31 }
 0x195   :  { %445 = vst.msk [vmem:[%s923_s5 + $0x28] sm:$0xff] %vm439_vm2, %v428_v51  ;;  %452 = vst.msk [vmem:[%s923_s5 + $0x60] sm:$0xff] %vm439_vm2, %v435_v32  ;;  %v420_v37 = vmul.f32 0.01, %v404_v33  ;;  %v413_v38 = vmul.f32 0.01, %v397_v34 }
 0x196   :  { %v350_v39 = vpop.xlane.xlu1 %349  ;;  %v371_v40 = vpop.xlane.xlu0 %370 }
 0x197   :  { %v436_v41 = vmax.f32 %v404_v33, %v420_v37  ;;  %v429_v42 = vmax.f32 %v397_v34, %v413_v38  ;;  %v398_v62 = vadd.f32 %v382_v35, %v350_v39  ;;  %v405_v43 = vadd.f32 %v389_v36, %v371_v40 }
 0x199   :  { %453 = vst.msk [vmem:[%s923_s5 + $0x68] sm:$0xff] %vm439_vm2, %v436_v41  ;;  %446 = vst.msk [vmem:[%s923_s5 + $0x30] sm:$0xff] %vm439_vm2, %v429_v42  ;;  %v414_v45 = vmul.f32 0.01, %v398_v62  ;;  %v421_v46 = vmul.f32 0.01, %v405_v43 }
 0x19a   :  { %v374_v47 = vpop.xlane.xlu1 %373 }
 0x19b   :  { %v430_v48 = vmax.f32 %v398_v62, %v414_v45  ;;  %v437_v49 = vmax.f32 %v405_v43, %v421_v46  ;;  %v406_v50 = vadd.f32 %v390_v44, %v374_v47 }
 0x19d   :  { %447 = vst.msk [vmem:[%s923_s5 + $0x38] sm:$0xff] %vm439_vm2, %v430_v48  ;;  %454 = vst.msk [vmem:[%s923_s5 + $0x70] sm:$0xff] %vm439_vm2, %v437_v49  ;;  %v422_v52 = vmul.f32 0.01, %v406_v50 }
 0x19f   :  { %v438_v53 = vmax.f32 %v406_v50, %v422_v52 }
 0x1a1   :  { %455 = vst.msk [vmem:[%s923_s5 + $0x78] sm:$0xff] %vm439_vm2, %v438_v53 }

</bundles_post_ra>
